<compile_context>
chip_gen: v6e
topology: v6e:2x2x1
jax: 0.10.0
libtpu: 0.0.40
codegen_flags: <defaults>
</compile_context>

<pallas_src>
from functools import partial

import jax
import jax.numpy as jnp
import numpy as np
from jax.experimental import pallas as pl
from jax.experimental.pallas import tpu as pltpu


def _residual_transformer_kernel(x_ref, w1_ref, w2_ref, w3_ref, out_ref,
                                 hpad_ref, *, W, PAD):
    Cin, M = x_ref.shape                      # (Cin, H*W), lane-dense
    ngf = w1_ref.shape[0]

    x_f32 = x_ref[...]                        # residual kept in f32

    # ---- conv1: 1x1 (Cin -> ngf), channel-first -> (ngf, M), ReLU ----------
    h1 = jnp.dot(w1_ref[...], x_f32.astype(jnp.bfloat16),
                 preferred_element_type=jnp.float32)
    h1 = jnp.maximum(h1, 0.0).astype(jnp.bfloat16)

    # ---- flat zero-padded activation scratch (lane-aligned full stores) ----
    hpad_ref[:, 0:PAD] = jnp.zeros((ngf, PAD), jnp.bfloat16)
    hpad_ref[:, PAD + M:PAD + M + PAD] = jnp.zeros((ngf, PAD), jnp.bfloat16)
    hpad_ref[:, PAD:PAD + M] = h1

    # ---- per-column masks for horizontal taps (hoisted out of the loop) ----
    col = jax.lax.broadcasted_iota(jnp.int32, (1, M), 1) % W
    mask_l = jnp.broadcast_to((col != 0).astype(jnp.bfloat16), (ngf, M))
    mask_r = jnp.broadcast_to((col != W - 1).astype(jnp.bfloat16), (ngf, M))

    # ---- conv2: 3x3 / pad=1 as nine accumulated tap matmuls, then ReLU -----
    acc = jnp.zeros((ngf, M), jnp.float32)
    for k in range(9):
        dy, dx = k // 3, k % 3
        off = (dy - 1) * W + (dx - 1)
        tap = hpad_ref[:, PAD + off:PAD + off + M]        # (ngf, M) bf16
        if dx == 0:
            tap = tap * mask_l                            # x-1 invalid at x==0
        elif dx == 2:
            tap = tap * mask_r                            # x+1 invalid at x==W-1
        acc = acc + jnp.dot(w2_ref[k], tap,
                            preferred_element_type=jnp.float32)
    h2 = jnp.maximum(acc, 0.0).astype(jnp.bfloat16)       # (ngf, M)

    # ---- conv3: 1x1 (ngf -> Cin) transposed; residual add + ReLU in f32 ----
    y = jnp.dot(w3_ref[...], h2, preferred_element_type=jnp.float32)
    out_ref[...] = jnp.maximum(y + x_f32, 0.0)            # (Cin, M) lane-dense


@jax.jit
def residual_transformer(x_nchw, w1k, w2k, w3k):
    """x_nchw: (N, Cin, H, W) f32 (PyTorch layout). Returns (N, Cin, H, W) f32."""
    N, Cin, H, W = x_nchw.shape
    M = H * W
    ngf = w1k.shape[0]
    PAD = max(128, ((W + 1 + 127) // 128) * 128)   # >= W+1 halo, lane-aligned

    x_flat = x_nchw.reshape(N, Cin, M)             # pure reshape, no transpose
    kernel = partial(_residual_transformer_kernel, W=W, PAD=PAD)

    out_flat = pl.pallas_call(
        kernel,
        out_shape=jax.ShapeDtypeStruct((N, Cin, M), jnp.float32),
        grid_spec=pltpu.PrefetchScalarGridSpec(
            num_scalar_prefetch=0,
            grid=(N,),
            in_specs=[
                pl.BlockSpec((None, Cin, M), lambda n: (n, 0, 0)),
                pl.BlockSpec((ngf, Cin), lambda n: (0, 0)),
                pl.BlockSpec((9, ngf, ngf), lambda n: (0, 0, 0)),
                pl.BlockSpec((Cin, ngf), lambda n: (0, 0)),
            ],
            out_specs=pl.BlockSpec((None, Cin, M), lambda n: (n, 0, 0)),
            scratch_shapes=[
                pltpu.VMEM((ngf, M + 2 * PAD), jnp.bfloat16),  # padded conv1 act
            ],
        ),
        compiler_params=pltpu.CompilerParams(
            dimension_semantics=("parallel",),
        ),
    )(x_flat, w1k, w2k, w3k)
    return out_flat.reshape(N, Cin, H, W)


def init_params(key, input_nc, ngf):
    """Deterministic synthetic parameters in the module's PyTorch layouts:
    conv1 (ngf, input_nc, 1, 1), conv2 (ngf, ngf, 3, 3), conv3 (input_nc, ngf, 1, 1),
    all bias=False."""
    k1, k2, k3 = jax.random.split(key, 3)
    w1 = jax.random.normal(k1, (ngf, input_nc, 1, 1), jnp.float32) * 0.2
    w2 = jax.random.normal(k2, (ngf, ngf, 3, 3), jnp.float32) * 0.1
    w3 = jax.random.normal(k3, (input_nc, ngf, 1, 1), jnp.float32) * 0.1
    return w1, w2, w3


def pack_params(pt_params):
    """Pack/cast weights for the kernel ONCE at init time (review item 11).
      w1k: (ngf, Cin) bf16
      w2k: (9, ngf_out, ngf_in) bf16 with k = dy*3 + dx
      w3k: (Cin, ngf) bf16
    """
    w1, w2, w3 = pt_params
    ngf = w1.shape[0]
    w1k = w1[:, :, 0, 0].astype(jnp.bfloat16)
    w2k = jnp.transpose(w2, (2, 3, 0, 1)).reshape(9, ngf, ngf).astype(jnp.bfloat16)
    w3k = w3[:, :, 0, 0].astype(jnp.bfloat16)
    return w1k, w2k, w3k


def reference(x_nchw, pt_params):
    """Pure-JAX f32 reference matching the PyTorch module's forward."""
    w1, w2, w3 = pt_params
    dn = ('NCHW', 'OIHW', 'NCHW')
    p = jax.lax.Precision.HIGHEST
    h = jax.lax.conv_general_dilated(x_nchw, w1, (1, 1), 'VALID',
                                     dimension_numbers=dn, precision=p)
    h = jnp.maximum(h, 0.0)
    h = jax.lax.conv_general_dilated(h, w2, (1, 1), ((1, 1), (1, 1)),
                                     dimension_numbers=dn, precision=p)
    h = jnp.maximum(h, 0.0)
    y = jax.lax.conv_general_dilated(h, w3, (1, 1), 'VALID',
                                     dimension_numbers=dn, precision=p)
    return jnp.maximum(y + x_nchw, 0.0)


if __name__ == "__main__":
    N, Cin, H, W, ngf = 2, 4, 16, 16, 32   # stride = 1 (module default)
    key = jax.random.PRNGKey(0)
    kx, kp = jax.random.split(key)

    x = jax.random.normal(kx, (N, Cin, H, W), jnp.float32)   # PyTorch NCHW
    pt_params = init_params(kp, Cin, ngf)                    # f32, PyTorch layouts
    w1k, w2k, w3k = pack_params(pt_params)                   # bf16, kernel packing

    out = jax.block_until_ready(residual_transformer(x, w1k, w2k, w3k))
    assert out.shape == (N, Cin, H, W)

    ref = reference(x, pt_params)
    np.testing.assert_allclose(np.asarray(out), np.asarray(ref),
                               rtol=3e-2, atol=3e-2)
    print("KERNEL_OK")
</pallas_src>

<mosaic_0001>
module attributes {stable_mosaic.version = 11 : i64} {
  func.func @_residual_transformer_kernel(%arg0: i32, %arg1: memref<1x4x256xf32, #tpu.memory_space<vmem>>, %arg2: memref<32x4xbf16, #tpu.memory_space<vmem>>, %arg3: memref<9x32x32xbf16, #tpu.memory_space<vmem>>, %arg4: memref<4x32xbf16, #tpu.memory_space<vmem>>, %arg5: memref<1x4x256xf32, #tpu.memory_space<vmem>>, %arg6: memref<32x512xbf16, #tpu.memory_space<vmem>>) attributes {dimension_semantics = [#tpu.dimension_semantics<parallel>], iteration_bounds = array<i64: 2>, scalar_prefetch = 0 : i64, scratch_operands = 1 : i64, tpu.core_type = #tpu.core_type<tc>, window_params = [{transform_indices = @transform_0, window_bounds = array<i64: 1, 4, 256>}, {pipeline_mode = #tpu.pipeline_mode<synchronous>, transform_indices = @transform_1, window_bounds = array<i64: 32, 4>}, {pipeline_mode = #tpu.pipeline_mode<synchronous>, transform_indices = @transform_2, window_bounds = array<i64: 9, 32, 32>}, {pipeline_mode = #tpu.pipeline_mode<synchronous>, transform_indices = @transform_3, window_bounds = array<i64: 4, 32>}, {transform_indices = @transform_4, window_bounds = array<i64: 1, 4, 256>}]} {
    %c0 = arith.constant 0 : index
    %c0_0 = arith.constant 0 : index
    %c0_1 = arith.constant 0 : index
    %0 = vector.load %arg1[%c0, %c0_0, %c0_1] : memref<1x4x256xf32, #tpu.memory_space<vmem>>, vector<1x4x256xf32>
    %1 = vector.shape_cast %0 : vector<1x4x256xf32> to vector<4x256xf32>
    %c0_2 = arith.constant 0 : index
    %c0_3 = arith.constant 0 : index
    %2 = vector.load %arg2[%c0_2, %c0_3] : memref<32x4xbf16, #tpu.memory_space<vmem>>, vector<32x4xbf16>
    %3 = arith.truncf %1 : vector<4x256xf32> to vector<4x256xbf16>
    %cst = arith.constant dense<0.000000e+00> : vector<32x256xf32>
    %4 = tpu.matmul %2, %3, %cst {dimension_numbers = #tpu.dot_dimension_numbers<[1], [0], [0], [1], [0, 0, 1, 1], [], []>} : vector<32x4xbf16>, vector<4x256xbf16>, vector<32x256xf32> -> vector<32x256xf32>
    %cst_4 = arith.constant 0.000000e+00 : f32
    %5 = vector.broadcast %cst_4 : f32 to vector<32x256xf32>
    %6 = arith.maximumf %4, %5 : vector<32x256xf32>
    %7 = arith.truncf %6 : vector<32x256xf32> to vector<32x256xbf16>
    %cst_5 = arith.constant 0.000000e+00 : bf16
    %8 = vector.broadcast %cst_5 : bf16 to vector<32x128xbf16>
    %c0_6 = arith.constant 0 : index
    %c0_7 = arith.constant 0 : index
    %9 = vector.load %arg6[%c0_6, %c0_7] : memref<32x512xbf16, #tpu.memory_space<vmem>>, vector<32x128xbf16>
    tpu.vector_store %arg6[%c0_6, %c0_7], %8 {strides = array<i32>} : memref<32x512xbf16, #tpu.memory_space<vmem>>, vector<32x128xbf16>,
    %cst_8 = arith.constant 0.000000e+00 : bf16
    %10 = vector.broadcast %cst_8 : bf16 to vector<32x128xbf16>
    %c0_9 = arith.constant 0 : index
    %c384 = arith.constant 384 : index
    %11 = vector.load %arg6[%c0_9, %c384] : memref<32x512xbf16, #tpu.memory_space<vmem>>, vector<32x128xbf16>
    tpu.vector_store %arg6[%c0_9, %c384], %10 {strides = array<i32>} : memref<32x512xbf16, #tpu.memory_space<vmem>>, vector<32x128xbf16>,
    %c0_10 = arith.constant 0 : index
    %c128 = arith.constant 128 : index
    %12 = vector.load %arg6[%c0_10, %c128] : memref<32x512xbf16, #tpu.memory_space<vmem>>, vector<32x256xbf16>
    tpu.vector_store %arg6[%c0_10, %c128], %7 {strides = array<i32>} : memref<32x512xbf16, #tpu.memory_space<vmem>>, vector<32x256xbf16>,
    %13 = tpu.iota {dimensions = array<i32: 1>} : vector<1x256xi32>
    %c16_i32 = arith.constant 16 : i32
    %c0_i32 = arith.constant 0 : i32
    %14 = arith.cmpi eq, %c16_i32, %c0_i32 : i32
    %c1_i32 = arith.constant 1 : i32
    %15 = arith.select %14, %c1_i32, %c16_i32 : i32
    %16 = vector.broadcast %15 : i32 to vector<1x256xi32>
    %17 = arith.remsi %13, %16 : vector<1x256xi32>
    %c0_i32_11 = arith.constant 0 : i32
    %18 = vector.broadcast %c0_i32_11 : i32 to vector<1x256xi32>
    %19 = arith.cmpi ne, %17, %18 : vector<1x256xi32>
    %c0_i32_12 = arith.constant 0 : i32
    %20 = vector.broadcast %c0_i32_12 : i32 to vector<1x256xi32>
    %21 = arith.cmpi slt, %17, %20 : vector<1x256xi32>
    %c0_i32_13 = arith.constant 0 : i32
    %22 = arith.cmpi slt, %15, %c0_i32_13 : i32
    %23 = vector.broadcast %22 : i1 to vector<1x256xi1>
    %24 = vector.broadcast %23 : vector<1x256xi1> to vector<1x256xi1>
    %25 = arith.xori %21, %24 : vector<1x256xi1>
    %26 = arith.andi %25, %19 : vector<1x256xi1>
    %27 = vector.broadcast %15 : i32 to vector<1x256xi32>
    %28 = arith.addi %17, %27 : vector<1x256xi32>
    %29 = arith.select %26, %28, %17 : vector<1x256xi1>, vector<1x256xi32>
    %c0_i32_14 = arith.constant 0 : i32
    %30 = vector.broadcast %c0_i32_14 : i32 to vector<1x256xi32>
    %31 = arith.cmpi ne, %29, %30 : vector<1x256xi32>
    %32 = arith.extui %31 : vector<1x256xi1> to vector<1x256xi32>
    %33 = arith.sitofp %32 : vector<1x256xi32> to vector<1x256xf32>
    %34 = arith.truncf %33 : vector<1x256xf32> to vector<1x256xbf16>
    %35 = vector.shape_cast %34 : vector<1x256xbf16> to vector<1x256xbf16>
    %36 = vector.broadcast %35 : vector<1x256xbf16> to vector<32x256xbf16>
    %c15_i32 = arith.constant 15 : i32
    %37 = vector.broadcast %c15_i32 : i32 to vector<1x256xi32>
    %38 = arith.cmpi ne, %29, %37 : vector<1x256xi32>
    %39 = arith.extui %38 : vector<1x256xi1> to vector<1x256xi32>
    %40 = arith.sitofp %39 : vector<1x256xi32> to vector<1x256xf32>
    %41 = arith.truncf %40 : vector<1x256xf32> to vector<1x256xbf16>
    %42 = vector.shape_cast %41 : vector<1x256xbf16> to vector<1x256xbf16>
    %43 = vector.broadcast %42 : vector<1x256xbf16> to vector<32x256xbf16>
    %cst_15 = arith.constant 0.000000e+00 : f32
    %44 = vector.broadcast %cst_15 : f32 to vector<32x256xf32>
    %c0_16 = arith.constant 0 : index
    %c111 = arith.constant 111 : index
    %45 = vector.load %arg6[%c0_16, %c111] : memref<32x512xbf16, #tpu.memory_space<vmem>>, vector<32x256xbf16>
    %46 = arith.mulf %45, %36 : vector<32x256xbf16>
    %c0_17 = arith.constant 0 : index
    %c0_18 = arith.constant 0 : index
    %c0_19 = arith.constant 0 : index
    %47 = vector.load %arg3[%c0_17, %c0_18, %c0_19] : memref<9x32x32xbf16, #tpu.memory_space<vmem>>, vector<1x32x32xbf16>
    %48 = vector.shape_cast %47 : vector<1x32x32xbf16> to vector<32x32xbf16>
    %cst_20 = arith.constant dense<0.000000e+00> : vector<32x256xf32>
    %49 = tpu.matmul %48, %46, %cst_20 {dimension_numbers = #tpu.dot_dimension_numbers<[1], [0], [0], [1], [0, 0, 1, 1], [], []>} : vector<32x32xbf16>, vector<32x256xbf16>, vector<32x256xf32> -> vector<32x256xf32>
    %50 = arith.addf %44, %49 : vector<32x256xf32>
    %c0_21 = arith.constant 0 : index
    %c112 = arith.constant 112 : index
    %51 = vector.load %arg6[%c0_21, %c112] : memref<32x512xbf16, #tpu.memory_space<vmem>>, vector<32x256xbf16>
    %c1 = arith.constant 1 : index
    %c0_22 = arith.constant 0 : index
    %c0_23 = arith.constant 0 : index
    %52 = vector.load %arg3[%c1, %c0_22, %c0_23] : memref<9x32x32xbf16, #tpu.memory_space<vmem>>, vector<1x32x32xbf16>
    %53 = vector.shape_cast %52 : vector<1x32x32xbf16> to vector<32x32xbf16>
    %cst_24 = arith.constant dense<0.000000e+00> : vector<32x256xf32>
    %54 = tpu.matmul %53, %51, %cst_24 {dimension_numbers = #tpu.dot_dimension_numbers<[1], [0], [0], [1], [0, 0, 1, 1], [], []>} : vector<32x32xbf16>, vector<32x256xbf16>, vector<32x256xf32> -> vector<32x256xf32>
    %55 = arith.addf %50, %54 : vector<32x256xf32>
    %c0_25 = arith.constant 0 : index
    %c113 = arith.constant 113 : index
    %56 = vector.load %arg6[%c0_25, %c113] : memref<32x512xbf16, #tpu.memory_space<vmem>>, vector<32x256xbf16>
    %57 = arith.mulf %56, %43 : vector<32x256xbf16>
    %c2 = arith.constant 2 : index
    %c0_26 = arith.constant 0 : index
    %c0_27 = arith.constant 0 : index
    %58 = vector.load %arg3[%c2, %c0_26, %c0_27] : memref<9x32x32xbf16, #tpu.memory_space<vmem>>, vector<1x32x32xbf16>
    %59 = vector.shape_cast %58 : vector<1x32x32xbf16> to vector<32x32xbf16>
    %cst_28 = arith.constant dense<0.000000e+00> : vector<32x256xf32>
    %60 = tpu.matmul %59, %57, %cst_28 {dimension_numbers = #tpu.dot_dimension_numbers<[1], [0], [0], [1], [0, 0, 1, 1], [], []>} : vector<32x32xbf16>, vector<32x256xbf16>, vector<32x256xf32> -> vector<32x256xf32>
    %61 = arith.addf %55, %60 : vector<32x256xf32>
    %c0_29 = arith.constant 0 : index
    %c127 = arith.constant 127 : index
    %62 = vector.load %arg6[%c0_29, %c127] : memref<32x512xbf16, #tpu.memory_space<vmem>>, vector<32x256xbf16>
    %63 = arith.mulf %62, %36 : vector<32x256xbf16>
    %c3 = arith.constant 3 : index
    %c0_30 = arith.constant 0 : index
    %c0_31 = arith.constant 0 : index
    %64 = vector.load %arg3[%c3, %c0_30, %c0_31] : memref<9x32x32xbf16, #tpu.memory_space<vmem>>, vector<1x32x32xbf16>
    %65 = vector.shape_cast %64 : vector<1x32x32xbf16> to vector<32x32xbf16>
    %cst_32 = arith.constant dense<0.000000e+00> : vector<32x256xf32>
    %66 = tpu.matmul %65, %63, %cst_32 {dimension_numbers = #tpu.dot_dimension_numbers<[1], [0], [0], [1], [0, 0, 1, 1], [], []>} : vector<32x32xbf16>, vector<32x256xbf16>, vector<32x256xf32> -> vector<32x256xf32>
    %67 = arith.addf %61, %66 : vector<32x256xf32>
    %c0_33 = arith.constant 0 : index
    %c128_34 = arith.constant 128 : index
    %68 = vector.load %arg6[%c0_33, %c128_34] : memref<32x512xbf16, #tpu.memory_space<vmem>>, vector<32x256xbf16>
    %c4 = arith.constant 4 : index
    %c0_35 = arith.constant 0 : index
    %c0_36 = arith.constant 0 : index
    %69 = vector.load %arg3[%c4, %c0_35, %c0_36] : memref<9x32x32xbf16, #tpu.memory_space<vmem>>, vector<1x32x32xbf16>
    %70 = vector.shape_cast %69 : vector<1x32x32xbf16> to vector<32x32xbf16>
    %cst_37 = arith.constant dense<0.000000e+00> : vector<32x256xf32>
    %71 = tpu.matmul %70, %68, %cst_37 {dimension_numbers = #tpu.dot_dimension_numbers<[1], [0], [0], [1], [0, 0, 1, 1], [], []>} : vector<32x32xbf16>, vector<32x256xbf16>, vector<32x256xf32> -> vector<32x256xf32>
    %72 = arith.addf %67, %71 : vector<32x256xf32>
    %c0_38 = arith.constant 0 : index
    %c129 = arith.constant 129 : index
    %73 = vector.load %arg6[%c0_38, %c129] : memref<32x512xbf16, #tpu.memory_space<vmem>>, vector<32x256xbf16>
    %74 = arith.mulf %73, %43 : vector<32x256xbf16>
    %c5 = arith.constant 5 : index
    %c0_39 = arith.constant 0 : index
    %c0_40 = arith.constant 0 : index
    %75 = vector.load %arg3[%c5, %c0_39, %c0_40] : memref<9x32x32xbf16, #tpu.memory_space<vmem>>, vector<1x32x32xbf16>
    %76 = vector.shape_cast %75 : vector<1x32x32xbf16> to vector<32x32xbf16>
    %cst_41 = arith.constant dense<0.000000e+00> : vector<32x256xf32>
    %77 = tpu.matmul %76, %74, %cst_41 {dimension_numbers = #tpu.dot_dimension_numbers<[1], [0], [0], [1], [0, 0, 1, 1], [], []>} : vector<32x32xbf16>, vector<32x256xbf16>, vector<32x256xf32> -> vector<32x256xf32>
    %78 = arith.addf %72, %77 : vector<32x256xf32>
    %c0_42 = arith.constant 0 : index
    %c143 = arith.constant 143 : index
    %79 = vector.load %arg6[%c0_42, %c143] : memref<32x512xbf16, #tpu.memory_space<vmem>>, vector<32x256xbf16>
    %80 = arith.mulf %79, %36 : vector<32x256xbf16>
    %c6 = arith.constant 6 : index
    %c0_43 = arith.constant 0 : index
    %c0_44 = arith.constant 0 : index
    %81 = vector.load %arg3[%c6, %c0_43, %c0_44] : memref<9x32x32xbf16, #tpu.memory_space<vmem>>, vector<1x32x32xbf16>
    %82 = vector.shape_cast %81 : vector<1x32x32xbf16> to vector<32x32xbf16>
    %cst_45 = arith.constant dense<0.000000e+00> : vector<32x256xf32>
    %83 = tpu.matmul %82, %80, %cst_45 {dimension_numbers = #tpu.dot_dimension_numbers<[1], [0], [0], [1], [0, 0, 1, 1], [], []>} : vector<32x32xbf16>, vector<32x256xbf16>, vector<32x256xf32> -> vector<32x256xf32>
    %84 = arith.addf %78, %83 : vector<32x256xf32>
    %c0_46 = arith.constant 0 : index
    %c144 = arith.constant 144 : index
    %85 = vector.load %arg6[%c0_46, %c144] : memref<32x512xbf16, #tpu.memory_space<vmem>>, vector<32x256xbf16>
    %c7 = arith.constant 7 : index
    %c0_47 = arith.constant 0 : index
    %c0_48 = arith.constant 0 : index
    %86 = vector.load %arg3[%c7, %c0_47, %c0_48] : memref<9x32x32xbf16, #tpu.memory_space<vmem>>, vector<1x32x32xbf16>
    %87 = vector.shape_cast %86 : vector<1x32x32xbf16> to vector<32x32xbf16>
    %cst_49 = arith.constant dense<0.000000e+00> : vector<32x256xf32>
    %88 = tpu.matmul %87, %85, %cst_49 {dimension_numbers = #tpu.dot_dimension_numbers<[1], [0], [0], [1], [0, 0, 1, 1], [], []>} : vector<32x32xbf16>, vector<32x256xbf16>, vector<32x256xf32> -> vector<32x256xf32>
    %89 = arith.addf %84, %88 : vector<32x256xf32>
    %c0_50 = arith.constant 0 : index
    %c145 = arith.constant 145 : index
    %90 = vector.load %arg6[%c0_50, %c145] : memref<32x512xbf16, #tpu.memory_space<vmem>>, vector<32x256xbf16>
    %91 = arith.mulf %90, %43 : vector<32x256xbf16>
    %c8 = arith.constant 8 : index
    %c0_51 = arith.constant 0 : index
    %c0_52 = arith.constant 0 : index
    %92 = vector.load %arg3[%c8, %c0_51, %c0_52] : memref<9x32x32xbf16, #tpu.memory_space<vmem>>, vector<1x32x32xbf16>
    %93 = vector.shape_cast %92 : vector<1x32x32xbf16> to vector<32x32xbf16>
    %cst_53 = arith.constant dense<0.000000e+00> : vector<32x256xf32>
    %94 = tpu.matmul %93, %91, %cst_53 {dimension_numbers = #tpu.dot_dimension_numbers<[1], [0], [0], [1], [0, 0, 1, 1], [], []>} : vector<32x32xbf16>, vector<32x256xbf16>, vector<32x256xf32> -> vector<32x256xf32>
    %95 = arith.addf %89, %94 : vector<32x256xf32>
    %cst_54 = arith.constant 0.000000e+00 : f32
    %96 = vector.broadcast %cst_54 : f32 to vector<32x256xf32>
    %97 = arith.maximumf %95, %96 : vector<32x256xf32>
    %98 = arith.truncf %97 : vector<32x256xf32> to vector<32x256xbf16>
    %c0_55 = arith.constant 0 : index
    %c0_56 = arith.constant 0 : index
    %99 = vector.load %arg4[%c0_55, %c0_56] : memref<4x32xbf16, #tpu.memory_space<vmem>>, vector<4x32xbf16>
    %cst_57 = arith.constant dense<0.000000e+00> : vector<4x256xf32>
    %100 = tpu.matmul %99, %98, %cst_57 {dimension_numbers = #tpu.dot_dimension_numbers<[1], [0], [0], [1], [0, 0, 1, 1], [], []>} : vector<4x32xbf16>, vector<32x256xbf16>, vector<4x256xf32> -> vector<4x256xf32>
    %101 = arith.addf %100, %1 : vector<4x256xf32>
    %cst_58 = arith.constant 0.000000e+00 : f32
    %102 = vector.broadcast %cst_58 : f32 to vector<4x256xf32>
    %103 = arith.maximumf %101, %102 : vector<4x256xf32>
    %c0_59 = arith.constant 0 : index
    %c0_60 = arith.constant 0 : index
    %c0_61 = arith.constant 0 : index
    %104 = vector.load %arg5[%c0_59, %c0_60, %c0_61] : memref<1x4x256xf32, #tpu.memory_space<vmem>>, vector<1x4x256xf32>
    %105 = vector.shape_cast %104 : vector<1x4x256xf32> to vector<4x256xf32>
    %106 = vector.shape_cast %103 : vector<4x256xf32> to vector<1x4x256xf32>
    tpu.vector_store %arg5[%c0_59, %c0_60, %c0_61], %106 {strides = array<i32>} : memref<1x4x256xf32, #tpu.memory_space<vmem>>, vector<1x4x256xf32>,
    return
  }
  func.func @transform_0(%arg0: i32) -> (i32, i32, i32) {
    %c0_i32 = arith.constant 0 : i32
    %c0_i32_0 = arith.constant 0 : i32
    %c0_i32_1 = arith.constant 0 : i32
    return %arg0, %c0_i32, %c0_i32_0 : i32, i32, i32
  }
  func.func @transform_1(%arg0: i32) -> (i32, i32) {
    %c0_i32 = arith.constant 0 : i32
    %c0_i32_0 = arith.constant 0 : i32
    %c0_i32_1 = arith.constant 0 : i32
    return %c0_i32, %c0_i32_0 : i32, i32
  }
  func.func @transform_2(%arg0: i32) -> (i32, i32, i32) {
    %c0_i32 = arith.constant 0 : i32
    %c0_i32_0 = arith.constant 0 : i32
    %c0_i32_1 = arith.constant 0 : i32
    %c0_i32_2 = arith.constant 0 : i32
    return %c0_i32, %c0_i32_0, %c0_i32_1 : i32, i32, i32
  }
  func.func @transform_3(%arg0: i32) -> (i32, i32) {
    %c0_i32 = arith.constant 0 : i32
    %c0_i32_0 = arith.constant 0 : i32
    %c0_i32_1 = arith.constant 0 : i32
    return %c0_i32, %c0_i32_0 : i32, i32
  }
  func.func @transform_4(%arg0: i32) -> (i32, i32, i32) {
    %c0_i32 = arith.constant 0 : i32
    %c0_i32_0 = arith.constant 0 : i32
    %c0_i32_1 = arith.constant 0 : i32
    return %arg0, %c0_i32, %c0_i32_0 : i32, i32, i32
  }
}

</mosaic_0001>

<bundles_post_ra>
// kernel: residual_transformer.1
= control target key start
LH: loop header
LB: loop body
LE: loop exit
PB: predicated region body
PF: predicated region fallthrough
CT: control target
= control target key end

     0   :  { %s1972_s15 = smov 0   ;;  %s2418_s0 = inlined_call_operand.vmem [shape: f32[2,4,256], index: 0, kind: input, shape index: {}]   ;;  %s2419_s1 = inlined_call_operand.vmem [shape: bf16[32,4], index: 1, kind: input, shape index: {}]   ;;  %s2420_s2 = inlined_call_operand.vmem [shape: bf16[9,32,32], index: 2, kind: input, shape index: {}]   ;;  %s2421_s3 = inlined_call_operand.vmem [shape: bf16[4,32], index: 3, kind: input, shape index: {}]   ;;  %s2422_s4 = inlined_call_operand.vmem [shape: f32[2,4,256], index: 4, kind: output, shape index: {}]  }
   0x1 LB: > { %s1724_s16 = sadd.s32 4294967295, %s1935_s15   ;;  %p1728_p0 = scmp.ge.s32.totalorder %s1935_s15, 1  ;;  %s1935_s15 = sphi %s1972_s15, %s14_s15  }
   0x2   : > { %p162_p1 = scmp.lt.s32.totalorder %s1935_s15, 3 }
   0x4   : > { %p163_p2 = pnand %p1728_p0, %p162_p1 }
   0x6   : > { %166 = sbr.rel (%p163_p2) target bundleno = 873 (0x369), region = 36 }
   0xb   : > { %p188_p3 = scmp.lt.s32.totalorder %s1724_s16, 1  ;;  %v330_v0 = vlaneseq  ;;  %v1937_v1 = vmov 0   ;;  %vm226_vm0 = vcmask 1041408   ;;  %vm219_vm1 = vcmask 31744   ;;  %v1898_v14 = vld [vmem:[%s2419_s1] sm:$0xff]   ;;  %s1939_s23 = smov 127  }
   0xc   : > { %265 = vmatprep.mubr.bf16.mxu0 %v1937_v1  ;;  %298 = vst [vmem:[#allocation2] sm:$0xf] %v1937_v1  ;;  %299 = vst [vmem:[#allocation2 + $0x10] sm:$0xf] %v1937_v1  ;;  %506 = vmatprep.mubr.bf16.mxu1 %v1937_v1  ;;  %v1938_v9 = vmov 0.0   ;;  %s1940_s24 = smov 111  }
   0xd   : > { %300 = vst [vmem:[#allocation2 + $0x20] sm:$0xf] %v1937_v1  ;;  %301 = vst [vmem:[#allocation2 + $0x30] sm:$0xf] %v1937_v1  ;;  %s2427_s16 = smov (!%p188_p3, %s1724_s16), 1  ;;  %v331_v2 = vand.u32 127, %v330_v0 }
   0xe   : > { %302 = vst [vmem:[#allocation2 + $0xc] sm:$0xf] %v1937_v1  ;;  %303 = vst [vmem:[#allocation2 + $0x1c] sm:$0xf] %v1937_v1  ;;  %s1871_s17 = sshll.u32 %s2427_s16, 3  ;;  %s1941_s25 = smov 1  }
   0xf   : > { %304 = vst [vmem:[#allocation2 + $0x2c] sm:$0xf] %v1937_v1  ;;  %305 = vst [vmem:[#allocation2 + $0x3c] sm:$0xf] %v1937_v1  ;;  %v332_v3 = vadd.s32 128, %v331_v2  ;;  %v337_v4 = vand.u32 15, %v331_v2  ;;  %s1998_s20 = scalar_lea.vmem %s2418_s0, %s1871_s17 }
  0x10   : > { %v199_v5 = vld [vmem:[%s1998_s20] sm:$0xff]  ;;  %s1942_s26 = smov 113   ;;  %v1899_v19 = vld [vmem:[%s2419_s1 + $0x8] sm:$0xff]   ;;  %s1943_s29 = smov 17   ;;  %vm575_vm6 = vcmask 138240   ;;  %vm389_vm7 = vcmask 908288  }
  0x11   : > { %v344_v6 = vand.u32 15, %v332_v3  ;;  %vm357_vm2 = vcmp.ne.s32.totalorder %v337_v4, 0  ;;  %vm365_vm3 = vcmp.ne.s32.totalorder %v337_v4, 15  ;;  %v2001_v7 = vcombine.high %v199_v5, %v199_v5  ;;  %s1944_s30 = smov 15   ;;  %s1945_s5 = smov 16  }
  0x12   : > { %v207_v8 = vpack.c.bf16 %v199_v5, %v199_v5  ;;  %v1742_v10 = vsel %vm357_vm2, 1.0, %v1938_v9  ;;  %v1744_v11 = vsel %vm365_vm3, 1.0, %v1938_v9  ;;  %vm716_vm8 = vcmask 121856   ;;  %s1946_s6 = smov 112  }
  0x13   : > { %2424 = vst [vmem:[#allocation3_spill] sm:$0xff] %v2001_v7  ;;  %vm358_vm4 = vcmp.ne.s32.totalorder %v344_v6, 0  ;;  %vm366_vm5 = vcmp.ne.s32.totalorder %v344_v6, 15  ;;  %v208_v12 = vpack.c.bf16 %v2001_v7, %v2001_v7  ;;  %vm651_vm9 = vcmask 924672  }
  0x14   : > { %v228_v13 = vsel %vm226_vm0, %v207_v8, 0  ;;  %v1743_v15 = vsel %vm358_vm4, 1.0, %v1938_v9  ;;  %v1745_v16 = vsel %vm366_vm5, 1.0, %v1938_v9  ;;  %vm795_vm10 = vcmask 1039360  }
  0x15   : > { %v1877_v17 = vpack.c.bf16 %v1743_v15, %v1742_v10  ;;  %1735 = vmatprep.subr.msk.bf16.mxu0 %vm226_vm0, %v208_v12  ;;  %v1878_v18 = vpack.c.bf16 %v1745_v16, %v1744_v11  ;;  %vm860_vm11 = vcmask 7168   ;;  %vm458_vm12 = vcmask 130048  }
  0x16   : > { %248 = vmatpush1.bf16.msra.mxu0 %v228_v13  ;;  %vm467_vm13 = vcmask 261120   ;;  %vm1387_vm14 = vcmask 916480  }
  0x17   : > { %792 = vrot.lane.b32.xlu1 %v1877_v17, %s1939_s23  ;;  %386 = vrot.lane.b32.xlu0 %v1877_v17, %s1940_s24 }
  0x19   : > { %1736 = vmatmul.mubr.msk.bf16.vlgmr.msra.gmra.mxu0 %vm219_vm1, %v1898_v14 }
  0x1a   : > { %275 = vmatprep.mubr.bf16.mxu0 %v1937_v1 }
  0x1b   : > { %1050 = vrot.lane.b32.xlu1 %v1878_v18, %s1941_s25  ;;  %648 = vrot.lane.b32.xlu0 %v1878_v18, %s1942_s26 }
  0x1f   : > { %1463 = vrot.lane.b32.xlu1 %v1878_v18, %s1943_s29  ;;  %1192 = vrot.lane.b32.xlu0 %v1877_v17, %s1944_s30 }
  0x21   : > { %1737 = vmatmul.mubr.msk.bf16.gmra.mxu0 %vm219_vm1, %v1899_v19 }
  0x22   : > { %622 = vmatprep.mubr.bf16.mxu0 %v1937_v1 }
  0x89   : > { %v2023_v20 = vpop.permute.xlu1 %792  ;;  %v387_v27 = vpop.permute.xlu0 %386 }
  0x8a   : > { %v2049_v47 = vrot.slane %v387_v27, 4 }
  0x8c   : > { %v2060_v55 = vsel %vm389_vm7, %v2049_v47, %v387_v27 }
  0x8d   : > { %v2025_v21 = vpop.permute.xlu1 %1050  ;;  %v649_v36 = vpop.permute.xlu0 %648 }
  0x8e   : > { %v2071_v2 = vrot.slane %v649_v36, 4 }
  0x90   : > { %v652_v9 = vsel %vm651_vm9, %v2071_v2, %v649_v36 }
  0x91   : > { %v1464_v24 = vpop.permute.xlu1 %1463  ;;  %v1193_v52 = vpop.permute.xlu0 %1192 }
  0x92   : > { %v2029_v30 = vrot.slane %v1464_v24, 4  ;;  %v2062_v57 = vrot.slane %v1193_v52, 4 }
  0x94   : > { %v1466_v38 = vsel %vm575_vm6, %v2029_v30, %v1464_v24  ;;  %v2077_v3 = vsel %vm716_vm8, %v2062_v57, %v1193_v52 }
  0xd9   : > { %v267_v22 = vpop.f32.mrf.mxu0 }
  0xda   : > { %v286_v25 = vmax.f32 %v267_v22, 0.0 }
  0xdb   : > { %v269_v23 = vpop.f32.mrf.mxu0 }
  0xdc   : > { %v287_v26 = vmax.f32 %v269_v23, 0.0 }
  0xdd   : > { %v271_v28 = vpop.f32.mrf.mxu0 }
  0xde   : > { %v2027_v29 = vpack.c.bf16 %v287_v26, %v286_v25  ;;  %v288_v32 = vmax.f32 %v271_v28, 0.0 }
  0xdf   : > { %v273_v31 = vpop.f32.mrf.mxu0 }
  0xe0   : > { %326 = vst [vmem:[#allocation2 + $0x4] sm:$0xff] %v2027_v29  ;;  %v289_v33 = vmax.f32 %v273_v31, 0.0  ;;  %v2041_v42 = vmul.bf16 %v2027_v29, %v1466_v38  ;;  %v2045_v45 = vpack.c.bf16 %v288_v32, %v286_v25  ;;  %v2116_v31 = vrot.slane %v2023_v20, 4 }
  0xe1   : > { %v277_v34 = vpop.f32.mrf.mxu0 }
  0xe2   : > { %v2032_v35 = vpack.c.bf16 %v289_v33, %v288_v32  ;;  %v290_v37 = vmax.f32 %v277_v34, 0.0  ;;  %v2043_v44 = vpack.c.bf16 %v289_v33, %v287_v26 }
  0xe3   : > { %v279_v39 = vpop.f32.mrf.mxu0 }
  0xe4   : > { %327 = vst [vmem:[#allocation2 + $0x14] sm:$0xff] %v2032_v35  ;;  %v291_v40 = vmax.f32 %v279_v39, 0.0  ;;  %v2038_v41 = vmul.bf16 %v2032_v35, %v1466_v38 }
  0xe5   : > { %v281_v43 = vpop.f32.mrf.mxu0 }
  0xe6   : > { %v2047_v46 = vpack.c.bf16 %v291_v40, %v290_v37  ;;  %v292_v48 = vmax.f32 %v281_v43, 0.0  ;;  %v1861_v50 = vcombine.high %v2041_v42, %v2038_v41  ;;  %v1860_v51 = vcombine.low %v2041_v42, %v2038_v41 }
  0xe7   : > { %v283_v49 = vpop.f32.mrf.mxu0  ;;  %v2056_v54 = vld [vmem:[#allocation2] sm:$0xff]  ;;  %v374_v59 = vld [vmem:[#allocation2 + $0x8] sm:$0xf] }
  0xe8   : > { %328 = vst [vmem:[#allocation2 + $0x24] sm:$0xff] %v2047_v46  ;;  %v293_v53 = vmax.f32 %v283_v49, 0.0  ;;  %v393_v0 = vmul.bf16 %v2060_v55, %v2056_v54  ;;  %v2081_v4 = vmul.bf16 %v2047_v46, %v2077_v3  ;;  %v394_v10 = vmul.bf16 %v2049_v47, %v374_v59 }
  0xe9   : > { %v2097_v15 = vpack.c.bf16 %v292_v48, %v290_v37  ;;  %v2104_v22 = vmul.bf16 %v2047_v46, %v1466_v38  ;;  %v655_v24 = vmul.bf16 %v652_v9, %v2056_v54  ;;  %v656_v25 = vmul.bf16 %v2071_v2, %v374_v59 }
  0xea   : > { %v2064_v58 = vpack.c.bf16 %v293_v53, %v292_v48  ;;  %v2095_v14 = vpack.c.bf16 %v293_v53, %v291_v40  ;;  %v800_v39 = vmul.bf16 %v2116_v31, %v374_v59  ;;  %v796_v40 = vsel %vm795_vm10, %v2116_v31, %v2023_v20 }
  0xeb   : > { %v375_v56 = vld [vmem:[#allocation2 + $0x10] sm:$0xff]  ;;  %v376_v60 = vld [vmem:[#allocation2 + $0x18] sm:$0xf] }
  0xec   : > { %v1755_v61 = vcombine.low %v374_v59, %v376_v60  ;;  %v1754_v62 = vcombine.high %v2056_v54, %v375_v56  ;;  %329 = vst [vmem:[#allocation2 + $0x34] sm:$0xff] %v2064_v58  ;;  %v395_v63 = vmul.bf16 %v2060_v55, %v375_v56  ;;  %v1753_v5 = vcombine.low %v2056_v54, %v375_v56 }
  0xed   : > { %v396_v8 = vmul.bf16 %v2049_v47, %v376_v60  ;;  %v2092_v11 = vmul.bf16 %v2064_v58, %v2077_v3  ;;  %v657_v12 = vmul.bf16 %v652_v9, %v375_v56  ;;  %v658_v13 = vmul.bf16 %v2071_v2, %v376_v60 }
  0xee   : > { %450 = vrot.lane.b32.xlu0 %v1755_v61, %s1945_s5  ;;  %448 = vrot.lane.b32.xlu1 %v1754_v62, %s1945_s5  ;;  %v1764_v6 = vcombine.high %v393_v0, %v395_v63  ;;  %v1763_v17 = vcombine.low %v393_v0, %v395_v63  ;;  %v2107_v23 = vmul.bf16 %v2064_v58, %v1466_v38 }
  0xef   : > { %v1765_v16 = vcombine.low %v394_v10, %v396_v8  ;;  %v1836_v18 = vcombine.high %v2081_v4, %v2092_v11  ;;  %v1835_v19 = vcombine.low %v2081_v4, %v2092_v11  ;;  %v1779_v26 = vcombine.high %v655_v24, %v657_v12  ;;  %v2122_v33 = vld [vmem:[#allocation2 + $0x20] sm:$0xff]  ;;  %v2135_v43 = vld [vmem:[#allocation2 + $0x28] sm:$0xf]  ;;  %v2161_v8 = vld [vmem:[#allocation2 + $0x2c] sm:$0xf] }
  0xf0   : > { %v1780_v27 = vcombine.low %v656_v25, %v658_v13  ;;  %v1864_v28 = vcombine.high %v2104_v22, %v2107_v23  ;;  %v1863_v32 = vcombine.low %v2104_v22, %v2107_v23  ;;  %v1778_v36 = vcombine.low %v655_v24, %v657_v12 }
  0xf1   : > { %v802_v38 = vmul.bf16 %v2116_v31, %v376_v60  ;;  %v801_v53 = vmul.bf16 %v796_v40, %v375_v56  ;;  %v799_v60 = vmul.bf16 %v796_v40, %v2056_v54  ;;  %v397_v56 = vmul.bf16 %v2060_v55, %v2122_v33 }
  0xf2   : > { %446 = vrot.lane.b32.xlu1 %v1753_v5, %s1945_s5  ;;  %565 = vrot.lane.b32.xlu0 %v1764_v6, %s1943_s29  ;;  %v398_v0 = vmul.bf16 %v2049_v47, %v2135_v43  ;;  %v659_v5 = vmul.bf16 %v652_v9, %v2122_v33  ;;  %v660_v6 = vmul.bf16 %v2071_v2, %v2135_v43  ;;  %v1052_v24 = vrot.slane %v2025_v21, 4 }
  0xf3   : > { %v2124_v34 = vld [vmem:[#allocation2 + $0x30] sm:$0xff]  ;;  %v2137_v48 = vld [vmem:[#allocation2 + $0x38] sm:$0xf]  ;;  %v1794_v52 = vcombine.low %v800_v39, %v802_v38  ;;  %v1793_v59 = vcombine.high %v799_v60, %v801_v53  ;;  %v1792_v62 = vcombine.low %v799_v60, %v801_v53  ;;  %v1045_v53 = vld [vmem:[#allocation2 + $0x1c] sm:$0xf] }
  0xf4   : > { %v1757_v37 = vcombine.high %v2122_v33, %v2124_v34  ;;  %v1758_v49 = vcombine.low %v2135_v43, %v2137_v48  ;;  %v1756_v61 = vcombine.low %v2122_v33, %v2124_v34  ;;  %v399_v20 = vmul.bf16 %v2060_v55, %v2124_v34  ;;  %v2163_v55 = vld [vmem:[#allocation2 + $0x3c] sm:$0xf] }
  0xf5   : > { %v400_v63 = vmul.bf16 %v2049_v47, %v2137_v48  ;;  %v661_v13 = vmul.bf16 %v652_v9, %v2124_v34  ;;  %v1203_v47 = vmul.bf16 %v2062_v57, %v2161_v8  ;;  %v1061_v9 = vmul.bf16 %v1052_v24, %v2161_v8 }
  0xf6   : > { %567 = vrot.lane.b32.xlu1 %v1765_v16, %s1943_s29  ;;  %563 = vrot.lane.b32.xlu0 %v1763_v17, %s1943_s29  ;;  %v1767_v54 = vcombine.high %v397_v56, %v399_v20  ;;  %v1766_v12 = vcombine.low %v397_v56, %v399_v20  ;;  %v662_v16 = vmul.bf16 %v2071_v2, %v2137_v48 }
  0xf7   : > { %v1768_v10 = vcombine.low %v398_v0, %v400_v63  ;;  %v1205_v17 = vmul.bf16 %v2062_v57, %v2163_v55  ;;  %v1782_v25 = vcombine.high %v659_v5, %v661_v13  ;;  %v1781_v38 = vcombine.low %v659_v5, %v661_v13 }
  0xf8   : > { %v803_v20 = vmul.bf16 %v796_v40, %v2122_v33  ;;  %v805_v56 = vmul.bf16 %v796_v40, %v2124_v34  ;;  %v806_v63 = vmul.bf16 %v2116_v31, %v2137_v48  ;;  %v1200_v33 = vmul.bf16 %v2032_v35, %v2077_v3 }
  0xf9   : > { %v1837_v2 = vcombine.low %v1203_v47, %v1205_v17  ;;  %v1198_v0 = vmul.bf16 %v2027_v29, %v2077_v3  ;;  %v1201_v48 = vmul.bf16 %v2062_v57, %v1045_v53  ;;  %v1851_v3 = vcombine.low %v2161_v8, %v2163_v55 }
  0xfa   : > { %706 = vrot.lane.b32.xlu1 %v1779_v26, %s1944_s30  ;;  %708 = vrot.lane.b32.xlu0 %v1780_v27, %s1944_s30  ;;  %v1783_v26 = vcombine.low %v660_v6, %v662_v16  ;;  %v1063_v27 = vmul.bf16 %v1052_v24, %v2163_v55  ;;  %v1795_v40 = vcombine.low %v803_v20, %v805_v56 }
  0xfb   : > { %v1476_v13 = vmul.bf16 %v2029_v30, %v2163_v55  ;;  %v1472_v11 = vmul.bf16 %v2029_v30, %v1045_v53 }
  0xfe   : > { %704 = vrot.lane.b32.xlu1 %v1778_v36, %s1944_s30  ;;  %454 = vrot.lane.b32.xlu0 %v1757_v37, %s1945_s5  ;;  %v1053_v36 = vsel %vm860_vm11, %v1052_v24, %v2025_v21 }
  0xff   : > { %v1058_v37 = vmul.bf16 %v2032_v35, %v1053_v36  ;;  %v1056_v39 = vmul.bf16 %v2027_v29, %v1053_v36  ;;  %v1832_v35 = vcombine.low %v1198_v0, %v1200_v33  ;;  %v1062_v29 = vmul.bf16 %v2064_v58, %v1053_v36 }
 0x100   : > { %v1474_v58 = vmul.bf16 %v2029_v30, %v2161_v8 }
 0x101   : > { %v1818_v5 = vcombine.low %v1056_v39, %v1058_v37 }
 0x102   : > { %456 = vrot.lane.b32.xlu1 %v1758_v49, %s1945_s5  ;;  %852 = vrot.lane.b32.xlu0 %v1794_v52, %s1941_s25  ;;  %v1823_v49 = vcombine.low %v1061_v9, %v1063_v27  ;;  %v1043_v52 = vld [vmem:[#allocation2 + $0xc] sm:$0xf] }
 0x103   : > { %v1057_v60 = vmul.bf16 %v1052_v24, %v1043_v52  ;;  %v1470_v4 = vmul.bf16 %v2029_v30, %v1043_v52 }
 0x106   : > { %850 = vrot.lane.b32.xlu1 %v1793_v59, %s1941_s25  ;;  %452 = vrot.lane.b32.xlu0 %v1756_v61, %s1945_s5  ;;  %v1819_v59 = vcombine.high %v1056_v39, %v1058_v37  ;;  %v1059_v61 = vmul.bf16 %v1052_v24, %v1045_v53 }
 0x108   : > { %v1820_v21 = vcombine.low %v1057_v60, %v1059_v61  ;;  %v1907_v61 = vld [vmem:[%s2420_s2 + $0x18] sm:$0xff]  }
 0x10a   : > { %848 = vrot.lane.b32.xlu1 %v1792_v62, %s1941_s25  ;;  %571 = vrot.lane.b32.xlu0 %v1767_v54, %s1943_s29  ;;  %v1796_v62 = vcombine.high %v803_v20, %v805_v56  ;;  %v804_v54 = vmul.bf16 %v2116_v31, %v2135_v43  ;;  %v1833_v43 = vcombine.high %v1198_v0, %v1200_v33  ;;  %v1908_v56 = vld [vmem:[%s2420_s2] sm:$0xff]  }
 0x10b   : > { %v1199_v31 = vmul.bf16 %v2062_v57, %v1043_v52  ;;  %v1909_v0 = vld [vmem:[%s2420_s2 + $0x20] sm:$0xff]  }
 0x10c   : > { %v1797_v34 = vcombine.low %v804_v54, %v806_v63 }
 0x10d   : > { %v1834_v6 = vcombine.low %v1199_v31, %v1201_v48 }
 0x10e   : > { %573 = vrot.lane.b32.xlu1 %v1768_v10, %s1943_s29  ;;  %569 = vrot.lane.b32.xlu0 %v1766_v12, %s1943_s29  ;;  %v1060_v10 = vmul.bf16 %v2047_v46, %v1053_v36  ;;  %v1848_v46 = vcombine.low %v1043_v52, %v1045_v53  ;;  %v1906_v36 = vld [vmem:[%s2420_s2 + $0x10] sm:$0xff]   ;;  %s197_s29 = scalar_lea.vmem %s2422_s4, %s1871_s17 }
 0x110   : > { %v1822_v12 = vcombine.high %v1060_v10, %v1062_v29  ;;  %v1821_v57 = vcombine.low %v1060_v10, %v1062_v29  ;;  %v1911_v10 = vld [vmem:[%s2420_s2 + $0x28] sm:$0xff]  }
 0x112   : > { %712 = vrot.lane.b32.xlu1 %v1782_v25, %s1944_s30  ;;  %714 = vrot.lane.b32.xlu0 %v1783_v26, %s1944_s30 }
 0x116   : > { %710 = vrot.lane.b32.xlu1 %v1781_v38, %s1944_s30  ;;  %1257 = vrot.lane.b32.xlu0 %v1837_v2, %s1942_s26 }
 0x11a   : > { %1115 = vrot.lane.b32.xlu1 %v1823_v49, %s1939_s23  ;;  %1107 = vrot.lane.b32.xlu0 %v1819_v59, %s1939_s23 }
 0x11e   : > { %1109 = vrot.lane.b32.xlu1 %v1820_v21, %s1939_s23  ;;  %856 = vrot.lane.b32.xlu0 %v1796_v62, %s1941_s25 }
 0x122   : > { %858 = vrot.lane.b32.xlu1 %v1797_v34, %s1941_s25  ;;  %854 = vrot.lane.b32.xlu0 %v1795_v40, %s1941_s25 }
 0x126   : > { %1249 = vrot.lane.b32.xlu1 %v1833_v43, %s1942_s26  ;;  %1105 = vrot.lane.b32.xlu0 %v1818_v5, %s1939_s23  ;;  %v1910_v43 = vld [vmem:[%s2420_s2 + $0x8] sm:$0xff]  }
 0x12a   : > { %1247 = vrot.lane.b32.xlu1 %v1832_v35, %s1942_s26  ;;  %1251 = vrot.lane.b32.xlu0 %v1834_v6, %s1942_s26 }
 0x12e   : > { %1385 = vrot.lane.b32.xlu1 %v1851_v3, %s1946_s6  ;;  %1113 = vrot.lane.b32.xlu0 %v1822_v12, %s1939_s23  ;;  %v1912_v12 = vld [vmem:[%s2420_s2 + $0x30] sm:$0xff]  }
 0x132   : > { %1255 = vrot.lane.b32.xlu1 %v1836_v18, %s1942_s26  ;;  %1111 = vrot.lane.b32.xlu0 %v1821_v57, %s1939_s23  ;;  %v1865_v18 = vcombine.low %v1474_v58, %v1476_v13 }
 0x136   : > { %1253 = vrot.lane.b32.xlu1 %v1835_v19, %s1942_s26  ;;  %1383 = vrot.lane.b32.xlu0 %v2095_v14, %s1946_s6 }
 0x13a   : > { %1379 = vrot.lane.b32.xlu1 %v1848_v46, %s1946_s6  ;;  %1381 = vrot.lane.b32.xlu0 %v2097_v15, %s1946_s6  ;;  %v1913_v46 = vld [vmem:[%s2420_s2 + $0x40] sm:$0xff]  }
 0x13e   : > { %1520 = vrot.lane.b32.xlu1 %v1861_v50, %s1940_s24  ;;  %1528 = vrot.lane.b32.xlu0 %v1865_v18, %s1940_s24  ;;  %v1862_v50 = vcombine.low %v1470_v4, %v1472_v11  ;;  %v1914_v4 = vld [vmem:[%s2420_s2 + $0x38] sm:$0xff]  }
 0x142   : > { %1526 = vrot.lane.b32.xlu1 %v1864_v28, %s1940_s24  ;;  %1377 = vrot.lane.b32.xlu0 %v2043_v44, %s1946_s6 }
 0x146   : > { %1524 = vrot.lane.b32.xlu1 %v1863_v32, %s1940_s24  ;;  %1375 = vrot.lane.b32.xlu0 %v2045_v45, %s1946_s6 }
 0x14a   : > { %1518 = vrot.lane.b32.xlu1 %v1860_v51, %s1940_s24  ;;  %1522 = vrot.lane.b32.xlu0 %v1862_v50, %s1940_s24 }
 0x160   : > { %v451_v19 = vpop.permute.xlu0 %450  ;;  %v449_v28 = vpop.permute.xlu1 %448 }
 0x161   : > { %v460_v26 = vsel %vm458_vm12, %v449_v28, %v451_v19 }
 0x164   : > { %v447_v8 = vpop.permute.xlu1 %446  ;;  %v566_v55 = vpop.permute.xlu0 %565 }
 0x165   : > { %v459_v27 = vsel %vm458_vm12, %v447_v8, %v449_v28  ;;  %v1915_v8 = vld [vmem:[%s2420_s2 + $0x48] sm:$0xff]  }
 0x168   : > { %v568_v30 = vpop.permute.xlu1 %567  ;;  %v564_v16 = vpop.permute.xlu0 %563 }
 0x169   : > { %v577_v52 = vsel %vm575_vm6, %v566_v55, %v568_v30  ;;  %v576_v20 = vsel %vm575_vm6, %v564_v16, %v566_v55 }
 0x16c   : > { %v707_v47 = vpop.permute.xlu1 %706  ;;  %v709_v17 = vpop.permute.xlu0 %708 }
 0x16d   : > { %v718_v63 = vsel %vm716_vm8, %v707_v47, %v709_v17 }
 0x170   : > { %v705_v22 = vpop.permute.xlu1 %704  ;;  %v455_v23 = vpop.permute.xlu0 %454 }
 0x171   : > { %v717_v40 = vsel %vm716_vm8, %v705_v22, %v707_v47 }
 0x174   : > { %v457_v32 = vpop.permute.xlu1 %456  ;;  %v2249_v24 = vpop.permute.xlu0 %852 }
 0x175   : > { %v462_v25 = vsel %vm458_vm12, %v455_v23, %v457_v32  ;;  %v1916_v32 = vld [vmem:[%s2420_s2 + $0x50] sm:$0xff]  }
 0x176   : > { %486 = vmatprep.subr.bf16.mxu1 %v462_v25 }
 0x178   : > { %v2251_v41 = vpop.permute.xlu1 %850  ;;  %v453_v42 = vpop.permute.xlu0 %452 }
 0x179   : > { %v461_v51 = vsel %vm458_vm12, %v453_v42, %v455_v23 }
 0x17a   : > { %487 = vmatpush1.bf16.msra.mxu1 %v461_v51  ;;  %v1917_v51 = vld [vmem:[%s2420_s2 + $0x60] sm:$0xff]  }
 0x17b   : > { %488 = vmatprep.subr.bf16.mxu1 %v460_v26 }
 0x17c   : > { %v2253_v2 = vpop.permute.xlu1 %848  ;;  %v572_v9 = vpop.permute.xlu0 %571 }
 0x17d   : > { %v861_v3 = vsel %vm860_vm11, %v2253_v2, %v2251_v41 }
 0x17e   : > { %489 = vmatpush1.bf16.msra.mxu1 %v459_v27 }
 0x180   : > { %v574_v37 = vpop.permute.xlu1 %573  ;;  %v570_v38 = vpop.permute.xlu0 %569 }
 0x181   : > { %v578_v39 = vsel %vm575_vm6, %v570_v38, %v572_v9  ;;  %1759 = vmatmul.mubr.msk.bf16.vlgmr.msra.gmra.mxu1 %vm467_vm13, %v1906_v36  ;;  %v579_v49 = vsel %vm575_vm6, %v572_v9, %v574_v37  ;;  %v1918_v9 = vld [vmem:[%s2420_s2 + $0x58] sm:$0xff]  }
 0x182   : > { %602 = vmatprep.subr.bf16.mxu0 %v579_v49  ;;  %516 = vmatprep.mubr.bf16.mxu1 %v1937_v1 }
 0x183   : > { %603 = vmatpush1.bf16.msra.mxu0 %v578_v39  ;;  %v1919_v39 = vld [vmem:[%s2420_s2 + $0x68] sm:$0xff]  }
 0x184   : > { %v713_v53 = vpop.permute.xlu1 %712  ;;  %604 = vmatprep.subr.bf16.mxu0 %v577_v52  ;;  %v715_v60 = vpop.permute.xlu0 %714 }
 0x185   : > { %v720_v59 = vsel %vm716_vm8, %v713_v53, %v715_v60 }
 0x186   : > { %743 = vmatprep.subr.bf16.mxu1 %v720_v59  ;;  %v1920_v59 = vld [vmem:[%s2420_s2 + $0x70] sm:$0xff]  }
 0x187   : > { %605 = vmatpush1.bf16.msra.mxu0 %v576_v20 }
 0x188   : > { %v711_v21 = vpop.permute.xlu1 %710  ;;  %v1258_v62 = vpop.permute.xlu0 %1257 }
 0x189   : > { %v719_v54 = vsel %vm716_vm8, %v711_v21, %v713_v53  ;;  %1760 = vmatmul.mubr.msk.bf16.gmra.mxu1 %vm467_vm13, %v1907_v61 }
 0x18a   : > { %1769 = vmatmul.mubr.msk.bf16.vlgmr.msra.gmra.mxu0 %vm467_vm13, %v1908_v56  ;;  %744 = vmatpush1.bf16.msra.mxu1 %v719_v54  ;;  %v1922_v54 = vld [vmem:[%s2420_s2 + $0x78] sm:$0xff]  }
 0x18b   : > { %745 = vmatprep.subr.bf16.mxu1 %v718_v63  ;;  %763 = vmatprep.mubr.bf16.mxu1 %v1937_v1  ;;  %v1923_v63 = vld [vmem:[%s2420_s2 + $0x88] sm:$0xff]  }
 0x18c   : > { %v1116_v33 = vpop.permute.xlu1 %1115  ;;  %v1108_v34 = vpop.permute.xlu0 %1107  ;;  %632 = vmatprep.mubr.bf16.mxu0 %v1937_v1 }
 0x18e   : > { %746 = vmatpush1.bf16.msra.mxu1 %v717_v40 }
 0x18f   : > { %993 = vmatprep.subr.bf16.mxu1 %v2095_v14 }
 0x190   : > { %v1110_v5 = vpop.permute.xlu1 %1109  ;;  %v857_v31 = vpop.permute.xlu0 %856 }
 0x191   : > { %1784 = vmatmul.mubr.msk.bf16.vlgmr.msra.gmra.mxu1 %vm467_vm13, %v1909_v0  ;;  %v1118_v55 = vsel %vm795_vm10, %v1108_v34, %v1110_v5 }
 0x192   : > { %1770 = vmatmul.mubr.msk.bf16.gmra.mxu0 %vm467_vm13, %v1910_v43  ;;  %994 = vmatpush1.bf16.msra.mxu1 %v2097_v15 }
 0x193   : > { %995 = vmatprep.subr.bf16.mxu1 %v2043_v44  ;;  %773 = vmatprep.mubr.bf16.mxu1 %v1937_v1  ;;  %v862_v44 = vsel %vm860_vm11, %v2251_v41, %v2249_v24 }
 0x194   : > { %v859_v48 = vpop.permute.xlu1 %858  ;;  %v855_v35 = vpop.permute.xlu0 %854  ;;  %907 = vmatprep.mubr.bf16.mxu0 %v1937_v1 }
 0x195   : > { %v863_v6 = vsel %vm860_vm11, %v855_v35, %v857_v31  ;;  %v864_v14 = vsel %vm860_vm11, %v857_v31, %v859_v48 }
 0x196   : > { %887 = vmatprep.subr.bf16.mxu0 %v864_v14  ;;  %996 = vmatpush1.bf16.msra.mxu1 %v2045_v45 }
 0x197   : > { %888 = vmatpush1.bf16.msra.mxu0 %v863_v6 }
 0x198   : > { %v1250_v15 = vpop.permute.xlu1 %1249  ;;  %889 = vmatprep.subr.bf16.mxu0 %v862_v44  ;;  %v1106_v29 = vpop.permute.xlu0 %1105 }
 0x199   : > { %1785 = vmatmul.mubr.msk.bf16.gmra.mxu1 %vm467_vm13, %v1911_v10  ;;  %v1117_v22 = vsel %vm795_vm10, %v1106_v29, %v1108_v34 }
 0x19a   : > { %1013 = vmatprep.mubr.bf16.mxu1 %v1937_v1 }
 0x19b   : > { %890 = vmatpush1.bf16.msra.mxu0 %v861_v3 }
 0x19c   : > { %v1248_v45 = vpop.permute.xlu1 %1247  ;;  %v1252_v57 = vpop.permute.xlu0 %1251 }
 0x19d   : > { %v1260_v23 = vsel %vm651_vm9, %v1250_v15, %v1252_v57  ;;  %v1259_v41 = vsel %vm651_vm9, %v1248_v45, %v1250_v15 }
 0x19e   : > { %1798 = vmatmul.mubr.msk.bf16.vlgmr.msra.gmra.mxu0 %vm467_vm13, %v1912_v12 }
 0x19f   : > { %917 = vmatprep.mubr.bf16.mxu0 %v1937_v1 }
 0x1a0   : > { %v1386_v58 = vpop.permute.xlu1 %1385  ;;  %v1114_v13 = vpop.permute.xlu0 %1113 }
 0x1a1   : > { %1810 = vmatmul.mubr.msk.bf16.vlgmr.msra.gmra.mxu1 %vm467_vm13, %v1913_v46  ;;  %v1120_v18 = vsel %vm795_vm10, %v1114_v13, %v1116_v33 }
 0x1a2   : > { %1143 = vmatprep.subr.bf16.mxu0 %v1120_v18  ;;  %1023 = vmatprep.mubr.bf16.mxu1 %v1937_v1 }
 0x1a4   : > { %v1256_v11 = vpop.permute.xlu1 %1255  ;;  %v1112_v50 = vpop.permute.xlu0 %1111 }
 0x1a5   : > { %v1119_v19 = vsel %vm795_vm10, %v1112_v50, %v1114_v13  ;;  %v1262_v28 = vsel %vm651_vm9, %v1256_v11, %v1258_v62  ;;  %v1921_v62 = vld [vmem:[%s2420_s2 + $0x80] sm:$0xff]  }
 0x1a6   : > { %1799 = vmatmul.mubr.msk.bf16.gmra.mxu0 %vm467_vm13, %v1914_v4  ;;  %1285 = vmatprep.subr.bf16.mxu1 %v1262_v28 }
 0x1a7   : > { %1144 = vmatpush1.bf16.msra.mxu0 %v1119_v19  ;;  %1163 = vmatprep.mubr.bf16.mxu0 %v1937_v1 }
 0x1a8   : > { %1145 = vmatprep.subr.bf16.mxu0 %v1118_v55  ;;  %v1254_v30 = vpop.permute.xlu1 %1253  ;;  %v1384_v16 = vpop.permute.xlu0 %1383 }
 0x1a9   : > { %v1261_v47 = vsel %vm651_vm9, %v1254_v30, %v1256_v11  ;;  %1811 = vmatmul.mubr.msk.bf16.gmra.mxu1 %vm467_vm13, %v1915_v8  ;;  %v1391_v17 = vsel %vm1387_vm14, %v1384_v16, %v1386_v58 }
 0x1aa   : > { %1286 = vmatpush1.bf16.msra.mxu1 %v1261_v47  ;;  %1305 = vmatprep.mubr.bf16.mxu1 %v1937_v1 }
 0x1ab   : > { %1146 = vmatpush1.bf16.msra.mxu0 %v1117_v22  ;;  %1287 = vmatprep.subr.bf16.mxu1 %v1260_v23 }
 0x1ac   : > { %1414 = vmatprep.subr.bf16.mxu0 %v1391_v17  ;;  %v1380_v24 = vpop.permute.xlu1 %1379  ;;  %v1382_v25 = vpop.permute.xlu0 %1381 }
 0x1ad   : > { %v1390_v42 = vsel %vm1387_vm14, %v1382_v25, %v1384_v16 }
 0x1ae   : > { %1824 = vmatmul.mubr.msk.bf16.vlgmr.msra.gmra.mxu0 %vm467_vm13, %v1916_v32  ;;  %1288 = vmatpush1.bf16.msra.mxu1 %v1259_v41 }
 0x1af   : > { %1415 = vmatpush1.bf16.msra.mxu0 %v1390_v42  ;;  %1173 = vmatprep.mubr.bf16.mxu0 %v1937_v1 }
 0x1b0   : > { %v1521_v26 = vpop.permute.xlu1 %1520  ;;  %v1529_v2 = vpop.permute.xlu0 %1528 }
 0x1b1   : > { %1838 = vmatmul.mubr.msk.bf16.vlgmr.msra.gmra.mxu1 %vm467_vm13, %v1917_v51 }
 0x1b2   : > { %1315 = vmatprep.mubr.bf16.mxu1 %v1937_v1 }
 0x1b4   : > { %v1527_v27 = vpop.permute.xlu1 %1526  ;;  %v1378_v36 = vpop.permute.xlu0 %1377 }
 0x1b5   : > { %v1389_v37 = vsel %vm1387_vm14, %v1378_v36, %v1380_v24  ;;  %v1533_v38 = vsel %vm389_vm7, %v1527_v27, %v1529_v2 }
 0x1b6   : > { %1825 = vmatmul.mubr.msk.bf16.gmra.mxu0 %vm467_vm13, %v1918_v9  ;;  %1416 = vmatprep.subr.bf16.mxu0 %v1389_v37 }
 0x1b7   : > { %1556 = vmatprep.subr.bf16.mxu1 %v1533_v38  ;;  %1434 = vmatprep.mubr.bf16.mxu0 %v1937_v1 }
 0x1b8   : > { %v1525_v49 = vpop.permute.xlu1 %1524  ;;  %v1376_v52 = vpop.permute.xlu0 %1375 }
 0x1b9   : > { %v1532_v53 = vsel %vm389_vm7, %v1525_v49, %v1527_v27  ;;  %v1388_v60 = vsel %vm1387_vm14, %v1376_v52, %v1378_v36  ;;  %1839 = vmatmul.mubr.msk.bf16.gmra.mxu1 %vm467_vm13, %v1919_v39 }
 0x1ba   : > { %1417 = vmatpush1.bf16.msra.mxu0 %v1388_v60  ;;  %1557 = vmatpush1.bf16.msra.mxu1 %v1532_v53 }
 0x1bb   : > { %1576 = vmatprep.mubr.bf16.mxu1 %v1937_v1 }
 0x1bc   : > { %v1519_v61 = vpop.permute.xlu1 %1518  ;;  %v1523_v20 = vpop.permute.xlu0 %1522 }
 0x1bd   : > { %v1530_v56 = vsel %vm389_vm7, %v1519_v61, %v1521_v26  ;;  %v1531_v21 = vsel %vm389_vm7, %v1521_v26, %v1523_v20 }
 0x1be   : > { %1852 = vmatmul.mubr.msk.bf16.vlgmr.msra.gmra.mxu0 %vm467_vm13, %v1920_v59  ;;  %1558 = vmatprep.subr.bf16.mxu1 %v1531_v21 }
 0x1bf   : > { %1559 = vmatpush1.bf16.msra.mxu1 %v1530_v56  ;;  %1444 = vmatprep.mubr.bf16.mxu0 %v1937_v1 }
 0x1c2   : > { %1866 = vmatmul.mubr.msk.bf16.vlgmr.msra.gmra.mxu1 %vm467_vm13, %v1921_v62 }
 0x1c3   : > { %1586 = vmatprep.mubr.bf16.mxu1 %v1937_v1 }
 0x1c6   : > { %1853 = vmatmul.mubr.msk.bf16.gmra.mxu0 %vm467_vm13, %v1922_v54 }
 0x1c7   : > { %1653 = vmatprep.mubr.bf16.mxu0 %v1937_v1 }
 0x1ca   : > { %1867 = vmatmul.mubr.msk.bf16.gmra.mxu1 %vm467_vm13, %v1923_v63 }
 0x241   : > { %v508_v33 = vpop.f32.mrf.mxu1 }
 0x243   : > { %v2380_v34 = vpop.f32.mrf.mxu1 }
 0x245   : > { %v512_v40 = vpop.f32.mrf.mxu1 }
 0x247   : > { %v514_v0 = vpop.f32.mrf.mxu1 }
 0x249   : > { %v2382_v43 = vpop.f32.mrf.mxu1 }
 0x24a   : > { %v624_v5 = vpop.f32.mrf.mxu0 }
 0x24b   : > { %v520_v31 = vpop.f32.mrf.mxu1  ;;  %v625_v2 = vadd.f32 %v624_v5, %v508_v33 }
 0x24c   : > { %v626_v48 = vpop.f32.mrf.mxu0 }
 0x24d   : > { %v522_v35 = vpop.f32.mrf.mxu1 }
 0x24e   : > { %v628_v6 = vpop.f32.mrf.mxu0 }
 0x24f   : > { %v524_v14 = vpop.f32.mrf.mxu1  ;;  %v629_v36 = vadd.f32 %v628_v6, %v512_v40 }
 0x250   : > { %v630_v10 = vpop.f32.mrf.mxu0 }
 0x251   : > { %v765_v44 = vpop.f32.mrf.mxu1  ;;  %v631_v62 = vadd.f32 %v630_v10, %v514_v0 }
 0x252   : > { %v634_v15 = vpop.f32.mrf.mxu0  ;;  %v784_v37 = vadd.f32 %v765_v44, %v625_v2  ;;  %v627_v44 = vadd.f32 %v626_v48, %v2380_v34 }
 0x253   : > { %v767_v29 = vpop.f32.mrf.mxu1 }
 0x254   : > { %v636_v1 = vpop.f32.mrf.mxu0 }
 0x255   : > { %v769_v3 = vpop.f32.mrf.mxu1  ;;  %v637_v63 = vadd.f32 %v636_v1, %v520_v31 }
 0x256   : > { %v638_v45 = vpop.f32.mrf.mxu0  ;;  %v786_v49 = vadd.f32 %v769_v3, %v629_v36  ;;  %v635_v3 = vadd.f32 %v634_v15, %v2382_v43 }
 0x257   : > { %v771_v12 = vpop.f32.mrf.mxu1  ;;  %v639_v33 = vadd.f32 %v638_v45, %v522_v35 }
 0x258   : > { %v640_v58 = vpop.f32.mrf.mxu0 }
 0x259   : > { %v775_v57 = vpop.f32.mrf.mxu1  ;;  %v641_v2 = vadd.f32 %v640_v58, %v524_v14 }
 0x25b   : > { %v777_v46 = vpop.f32.mrf.mxu1 }
 0x25d   : > { %v779_v13 = vpop.f32.mrf.mxu1 }
 0x25e   : > { %v909_v18 = vpop.f32.mrf.mxu0 }
 0x25f   : > { %v781_v4 = vpop.f32.mrf.mxu1  ;;  %v928_v52 = vadd.f32 %v909_v18, %v784_v37  ;;  %v787_v18 = vadd.f32 %v771_v12, %v631_v62  ;;  %v790_v37 = vadd.f32 %v779_v13, %v639_v33 }
 0x260   : > { %v911_v11 = vpop.f32.mrf.mxu0  ;;  %v791_v0 = vadd.f32 %v781_v4, %v641_v2 }
 0x261   : > { %v1015_v50 = vpop.f32.mrf.mxu1 }
 0x262   : > { %v913_v19 = vpop.f32.mrf.mxu0  ;;  %v1034_v56 = vadd.f32 %v1015_v50, %v928_v52  ;;  %v785_v50 = vadd.f32 %v767_v29, %v627_v44  ;;  %v788_v52 = vadd.f32 %v775_v57, %v635_v3 }
 0x263   : > { %v2384_v28 = vpop.f32.mrf.mxu1  ;;  %v930_v59 = vadd.f32 %v913_v19, %v786_v49  ;;  %v789_v19 = vadd.f32 %v777_v46, %v637_v63 }
 0x264   : > { %v915_v8 = vpop.f32.mrf.mxu0 }
 0x265   : > { %v1019_v55 = vpop.f32.mrf.mxu1  ;;  %v931_v10 = vadd.f32 %v915_v8, %v787_v18 }
 0x266   : > { %v919_v30 = vpop.f32.mrf.mxu0  ;;  %v1036_v5 = vadd.f32 %v1019_v55, %v930_v59  ;;  %v929_v55 = vadd.f32 %v911_v11, %v785_v50 }
 0x267   : > { %v1021_v16 = vpop.f32.mrf.mxu1 }
 0x268   : > { %v921_v47 = vpop.f32.mrf.mxu0  ;;  %v1037_v12 = vadd.f32 %v1021_v16, %v931_v10  ;;  %v1035_v4 = vadd.f32 %v2384_v28, %v929_v55  ;;  %v1617_v55 = vld [vmem:[%s2421_s3] sm:$0x3] }
 0x269   : > { %v2386_v17 = vpop.f32.mrf.mxu1  ;;  %v933_v35 = vadd.f32 %v921_v47, %v789_v19 }
 0x26a   : > { %v923_v22 = vpop.f32.mrf.mxu0 }
 0x26b   : > { %v1027_v23 = vpop.f32.mrf.mxu1  ;;  %v934_v1 = vadd.f32 %v923_v22, %v790_v37 }
 0x26c   : > { %v925_v32 = vpop.f32.mrf.mxu0  ;;  %v1039_v13 = vadd.f32 %v1027_v23, %v933_v35 }
 0x26d   : > { %v1029_v24 = vpop.f32.mrf.mxu1  ;;  %v935_v34 = vadd.f32 %v925_v32, %v791_v0 }
 0x26e   : > { %v1165_v25 = vpop.f32.mrf.mxu0 }
 0x26f   : > { %v1031_v41 = vpop.f32.mrf.mxu1  ;;  %v1184_v40 = vadd.f32 %v1165_v25, %v1034_v56  ;;  %v932_v25 = vadd.f32 %v919_v30, %v788_v52 }
 0x270   : > { %v2388_v42 = vpop.f32.mrf.mxu0  ;;  %v1041_v47 = vadd.f32 %v1031_v41, %v935_v34  ;;  %v1924_v34 = vld [vmem:[%s1998_s20] sm:$0xff] }
 0x271   : > { %v1307_v51 = vpop.f32.mrf.mxu1  ;;  %v1038_v8 = vadd.f32 %v2386_v17, %v932_v25 }
 0x272   : > { %v1169_v26 = vpop.f32.mrf.mxu0  ;;  %v1326_v45 = vadd.f32 %v1307_v51, %v1184_v40 }
 0x273   : > { %v2390_v9 = vpop.f32.mrf.mxu1  ;;  %v1186_v49 = vadd.f32 %v1169_v26, %v1036_v5  ;;  %v1040_v26 = vadd.f32 %v1029_v24, %v934_v1 }
 0x274   : > { %v1171_v27 = vpop.f32.mrf.mxu0 }
 0x275   : > { %v1311_v38 = vpop.f32.mrf.mxu1  ;;  %v1187_v30 = vadd.f32 %v1171_v27, %v1037_v12 }
 0x276   : > { %v1175_v39 = vpop.f32.mrf.mxu0  ;;  %v1328_v15 = vadd.f32 %v1311_v38, %v1186_v49  ;;  %v1185_v38 = vadd.f32 %v2388_v42, %v1035_v4 }
 0x277   : > { %v2392_v53 = vpop.f32.mrf.mxu1  ;;  %v1188_v16 = vadd.f32 %v1175_v39, %v1038_v8 }
 0x278   : > { %v1177_v60 = vpop.f32.mrf.mxu0  ;;  %v1329_v28 = vadd.f32 %v2392_v53, %v1187_v30  ;;  %v1327_v27 = vadd.f32 %v2390_v9, %v1185_v38 }
 0x279   : > { %v2394_v61 = vpop.f32.mrf.mxu1  ;;  %v1189_v32 = vadd.f32 %v1177_v60, %v1039_v13 }
 0x27a   : > { %v1179_v20 = vpop.f32.mrf.mxu0  ;;  %v1330_v60 = vadd.f32 %v2394_v61, %v1188_v16 }
 0x27b   : > { %v1319_v21 = vpop.f32.mrf.mxu1  ;;  %v1190_v51 = vadd.f32 %v1179_v20, %v1040_v26 }
 0x27c   : > { %v1181_v54 = vpop.f32.mrf.mxu0  ;;  %v1331_v17 = vadd.f32 %v1319_v21, %v1189_v32 }
 0x27d   : > { %v1321_v6 = vpop.f32.mrf.mxu1  ;;  %v1191_v23 = vadd.f32 %v1181_v54, %v1041_v47 }
 0x27e   : > { %v1436_v36 = vpop.f32.mrf.mxu0  ;;  %v1332_v41 = vadd.f32 %v1321_v6, %v1190_v51 }
 0x27f   : > { %v1323_v7 = vpop.f32.mrf.mxu1  ;;  %v1455_v14 = vadd.f32 %v1436_v36, %v1326_v45 }
 0x280   : > { %v1438_v31 = vpop.f32.mrf.mxu0  ;;  %v1333_v42 = vadd.f32 %v1323_v7, %v1191_v23 }
 0x281   : > { %v1456_v54 = vadd.f32 %v1438_v31, %v1327_v27 }
 0x282   : > { %v1440_v48 = vpop.f32.mrf.mxu0  ;;  %v1578_v43 = vpop.f32.mrf.mxu1 }
 0x283   : > { %v1457_v29 = vadd.f32 %v1440_v48, %v1328_v15  ;;  %v1597_v57 = vadd.f32 %v1578_v43, %v1455_v14  ;;  %v2425_v15 = vld [vmem:[#allocation3_spill] sm:$0xff] }
 0x284   : > { %v1442_v46 = vpop.f32.mrf.mxu0  ;;  %v1580_v58 = vpop.f32.mrf.mxu1 }
 0x285   : > { %v1605_v24 = vmax.f32 %v1597_v57, 0.0  ;;  %v1458_v39 = vadd.f32 %v1442_v46, %v1329_v28  ;;  %v1598_v50 = vadd.f32 %v1580_v58, %v1456_v54 }
 0x286   : > { %v1446_v22 = vpop.f32.mrf.mxu0  ;;  %v1582_v11 = vpop.f32.mrf.mxu1 }
 0x287   : > { %v1599_v59 = vadd.f32 %v1582_v11, %v1457_v29  ;;  %v1459_v2 = vadd.f32 %v1446_v22, %v1330_v60  ;;  %v1606_v35 = vmax.f32 %v1598_v50, 0.0 }
 0x288   : > { %v1448_v56 = vpop.f32.mrf.mxu0  ;;  %v1584_v62 = vpop.f32.mrf.mxu1 }
 0x289   : > { %v1607_v63 = vmax.f32 %v1599_v59, 0.0  ;;  %v1460_v3 = vadd.f32 %v1448_v56, %v1331_v17  ;;  %v1600_v19 = vadd.f32 %v1584_v62, %v1458_v39 }
 0x28a   : > { %v1450_v33 = vpop.f32.mrf.mxu0  ;;  %v1588_v5 = vpop.f32.mrf.mxu1 }
 0x28b   : > { %v1613_v40 = vpack.c.bf16 %v1607_v63, %v1605_v24  ;;  %v1461_v18 = vadd.f32 %v1450_v33, %v1332_v41  ;;  %v1601_v21 = vadd.f32 %v1588_v5, %v1459_v2  ;;  %v1608_v61 = vmax.f32 %v1600_v19, 0.0 }
 0x28c   : > { %v1452_v20 = vpop.f32.mrf.mxu0  ;;  %v1590_v44 = vpop.f32.mrf.mxu1 }
 0x28d   : > { %v1462_v37 = vadd.f32 %v1452_v20, %v1333_v42  ;;  %v1602_v49 = vadd.f32 %v1590_v44, %v1460_v3  ;;  %v1609_v7 = vmax.f32 %v1601_v21, 0.0  ;;  %v1614_v31 = vpack.c.bf16 %v1608_v61, %v1606_v35 }
 0x28e   : > { %v1592_v36 = vpop.f32.mrf.mxu1 }
 0x28f   : > { %v1603_v53 = vadd.f32 %v1592_v36, %v1461_v18  ;;  %v1610_v0 = vmax.f32 %v1602_v49, 0.0 }
 0x290   : > { %v1594_v6 = vpop.f32.mrf.mxu1 }
 0x291   : > { %v1604_v52 = vadd.f32 %v1594_v6, %v1462_v37  ;;  %v1611_v9 = vmax.f32 %v1603_v53, 0.0 }
 0x293   : > { %v1612_v10 = vmax.f32 %v1604_v52, 0.0  ;;  %v1615_v45 = vpack.c.bf16 %v1611_v9, %v1609_v7 }
 0x295   : > { %v1616_v1 = vpack.c.bf16 %v1612_v10, %v1610_v0 }
 0x297   : > { %1633 = vmatprep.subr.bf16.mxu0 %v1616_v1 }
 0x298   : > { %1634 = vmatpush1.bf16.msra.mxu0 %v1615_v45 }
 0x299   : > { %1635 = vmatprep.subr.bf16.mxu0 %v1614_v31 }
 0x29c   : > { %1636 = vmatpush1.bf16.msra.mxu0 %v1613_v40 }
 0x29f   : > { %1868 = vmatmul.mubr.msk.bf16.vlgmr.msra.gmra.mxu0 %vm467_vm13, %v1617_v55 }
 0x35f   : > { %v1655_v25 = vpop.f32.mrf.mxu0 }
 0x360   : > { %v1656_v48 = vadd.f32 %v1924_v34, %v1655_v25 }
 0x361   : > { %v1657_v43 = vpop.f32.mrf.mxu0 }
 0x362   : > { %v1658_v14 = vadd.f32 %v1657_v43, %v2425_v15  ;;  %v1662_v46 = vmax.f32 %v1656_v48, 0.0 }
 0x363   : > { %v1659_v12 = vpop.f32.mrf.mxu0 }
 0x364   : > { %v1663_v58 = vmax.f32 %v1658_v14, 0.0 }
 0x365   : > { %v1660_v13 = vpop.f32.mrf.mxu0 }
 0x366   : > { %v1666_v26 = vcombine.low %v1662_v46, %v1663_v58 }
 0x368   : > { %1668 = vst [vmem:[%s197_s29] sm:$0xff] %v1666_v26 }
 0x369 PF: > { %s14_s15 = sadd.s32 1, %s1935_s15  }
 0x36a   : > { %p11_p4 = scmp.ge.s32.totalorder %s14_s15, 4  }
 0x36c   :  { %13 = sbr.rel (!%p11_p4) target bundleno = 1 (0x1), region = 74 }

</bundles_post_ra>
